<compile_context>
chip_gen: v5e
topology: v5e:2x2
jax: 0.10.0
libtpu: 0.0.40
codegen_flags: <defaults>
</compile_context>

<pallas_src>
import functools
import math

import jax
import jax.numpy as jnp
from jax.experimental import pallas as pl
from jax.experimental.pallas import tpu as pltpu

BN_EPS = 1e-5


def _round_up(x, m):
    return (x + m - 1) // m * m


# --------------------------------------------------------------------------- kernels
def conv_stats_kernel(patches_ref, w_ref, y_ref, sum_ref, ssq_ref):
    """Per row-tile: MXU matmul + per-channel sum / sum-of-squares accumulation.

    patches_ref: (TM, CK_pad)   w_ref: (CK_pad, C_pad)
    y_ref:       (TM, C_pad)    sum_ref / ssq_ref: (1, C_pad) resident accumulators
    """
    @pl.when(pl.program_id(0) == 0)
    def _init():
        sum_ref[...] = jnp.zeros_like(sum_ref)
        ssq_ref[...] = jnp.zeros_like(ssq_ref)

    # Conv as matmul; f32 accumulation on the MXU.  (Bias dropped: cancels under BN.)
    y = jnp.dot(patches_ref[...], w_ref[...], preferred_element_type=jnp.float32)
    y_ref[...] = y.astype(y_ref.dtype)

    # Single pass over y for both statistics (zero-padded rows contribute 0).
    sum_ref[...] += jnp.sum(y, axis=0, keepdims=True)
    ssq_ref[...] += jnp.sum(y * y, axis=0, keepdims=True)


def bn_relu_kernel(y_ref, scale_ref, offset_ref, o_ref):
    """Per row-tile: fused per-channel FMA (BN) + ReLU."""
    y = y_ref[...]
    o_ref[...] = jnp.maximum(y * scale_ref[...] + offset_ref[...], 0.0).astype(o_ref.dtype)


# --------------------------------------------------------------------------- wrapper
def _im2col_1d(x, kernel, stride, pad, dil):
    """x: (N, C_in, L) -> patches (N*L_out, C_in*K), plus L_out."""
    n, c_in, l = x.shape
    l_eff = l + 2 * pad
    l_out = (l_eff - dil * (kernel - 1) - 1) // stride + 1
    x_pad = jnp.pad(x, ((0, 0), (0, 0), (pad, pad)))
    taps = [
        jax.lax.slice(
            x_pad,
            (0, 0, k * dil),
            (n, c_in, k * dil + stride * (l_out - 1) + 1),
            (1, 1, stride),
        )
        for k in range(kernel)
    ]
    # (K, N, C_in, L_out) -> (N, L_out, C_in, K) -> (N*L_out, C_in*K)
    patches = jnp.stack(taps, axis=0).transpose(1, 3, 2, 0).reshape(n * l_out, c_in * kernel)
    return patches, l_out


def _vmem_limit_bytes(tm, ck_pad, c_pad, in_bytes):
    # pass 1: double-buffered patches tile + weight + double-buffered y tile + stats
    est1 = (2 * tm * ck_pad * in_bytes + 2 * ck_pad * c_pad * in_bytes
            + 2 * tm * c_pad * 4 + 8 * c_pad * 4)
    # pass 2: double-buffered y-in + out tiles + scale/offset vectors
    est2 = 4 * tm * c_pad * 4 + 8 * c_pad * 4
    est = max(est1, est2)
    # Headroom, but stay well below v7x's 64 MiB physical VMEM.
    return int(min(max(2 * est, 16 * 1024 * 1024), 48 * 1024 * 1024))


@functools.partial(
    jax.jit,
    static_argnames=("kernel", "stride", "pad", "dil", "use_bf16", "tile_rows"))
def conv_block1d_forward(x, weight, bias, gamma, beta, *, kernel, stride, pad, dil,
                         use_bf16=False, tile_rows=512):
    """ConvBlock1d forward (norm='bn', training-mode batch stats).

    x: (N, C_in, L), weight: (C_out, C_in, K), bias/gamma/beta: (C_out,)
    returns: (N, C_out, L_out).  `bias` is accepted for API parity but not applied:
    a per-channel constant cancels exactly under BN mean-centering.
    """
    del bias  # cancels under train-mode BatchNorm centering
    n, c_in, _ = x.shape
    c_out = weight.shape[0]

    patches, l_out = _im2col_1d(x, kernel, stride, pad, dil)      # (R, CK)
    r = n * l_out
    ck = c_in * kernel

    # Lane-dense padding of the matmul dims.
    ck_pad = _round_up(ck, 128)
    c_pad = _round_up(c_out, 128)
    tm = tile_rows if r > tile_rows else _round_up(r, 8)
    r_pad = _round_up(r, tm)
    num_tiles = r_pad // tm

    in_dtype = jnp.bfloat16 if use_bf16 else x.dtype
    patches_p = jnp.zeros((r_pad, ck_pad), in_dtype).at[:r, :ck].set(
        patches.astype(in_dtype))
    w2d = weight.reshape(c_out, ck).T.astype(in_dtype)             # (CK, C_out)
    w_p = jnp.zeros((ck_pad, c_pad), in_dtype).at[:ck, :c_out].set(w2d)

    in_bytes = jnp.dtype(in_dtype).itemsize
    vmem_bytes = _vmem_limit_bytes(tm, ck_pad, c_pad, in_bytes)

    # ---- pass 1: conv matmul per tile + per-channel stats accumulation -------------
    y_full, col_sum, col_ssq = pl.pallas_call(
        conv_stats_kernel,
        grid=(num_tiles,),
        in_specs=[
            pl.BlockSpec((tm, ck_pad), lambda i: (i, 0)),
            pl.BlockSpec((ck_pad, c_pad), lambda i: (0, 0)),
        ],
        out_specs=(
            pl.BlockSpec((tm, c_pad), lambda i: (i, 0)),
            pl.BlockSpec((1, c_pad), lambda i: (0, 0)),
            pl.BlockSpec((1, c_pad), lambda i: (0, 0)),
        ),
        out_shape=(
            jax.ShapeDtypeStruct((r_pad, c_pad), jnp.float32),
            jax.ShapeDtypeStruct((1, c_pad), jnp.float32),
            jax.ShapeDtypeStruct((1, c_pad), jnp.float32),
        ),
        compiler_params=pltpu.CompilerParams(
            dimension_semantics=("arbitrary",),   # stats accumulate across row tiles
            vmem_limit_bytes=vmem_bytes),
    )(patches_p, w_p)

    # ---- tiny per-channel affine fold (host-side, (1, C_pad) vectors) --------------
    inv_r = jnp.float32(1.0 / r)
    mean = col_sum * inv_r
    var = jnp.maximum(col_ssq * inv_r - mean * mean, 0.0)          # biased variance
    gamma_p = jnp.zeros((1, c_pad), jnp.float32).at[0, :c_out].set(
        gamma.astype(jnp.float32))
    beta_p = jnp.zeros((1, c_pad), jnp.float32).at[0, :c_out].set(
        beta.astype(jnp.float32))
    scale = gamma_p * jax.lax.rsqrt(var + BN_EPS)
    offset = beta_p - mean * scale

    # ---- pass 2: fused BN FMA + ReLU per tile (parallel across tiles/cores) --------
    out2d = pl.pallas_call(
        bn_relu_kernel,
        grid=(num_tiles,),
        in_specs=[
            pl.BlockSpec((tm, c_pad), lambda i: (i, 0)),
            pl.BlockSpec((1, c_pad), lambda i: (0, 0)),
            pl.BlockSpec((1, c_pad), lambda i: (0, 0)),
        ],
        out_specs=pl.BlockSpec((tm, c_pad), lambda i: (i, 0)),
        out_shape=jax.ShapeDtypeStruct((r_pad, c_pad), x.dtype),
        compiler_params=pltpu.CompilerParams(
            dimension_semantics=("parallel",),
            vmem_limit_bytes=vmem_bytes),
    )(y_full, scale, offset)

    # (R_pad, C_pad) -> real rows/channels -> (N, L_out, C_out) -> (N, C_out, L_out)
    return out2d[:r, :c_out].reshape(n, l_out, c_out).transpose(0, 2, 1)


# --------------------------------------------------------------------------- helpers
def init_params(key, in_channels, out_channels, kernel):
    """He-uniform init matching init_layer / init_bn."""
    n = in_channels * kernel
    std = math.sqrt(2.0 / n)
    scale = std * math.sqrt(3.0)
    weight = jax.random.uniform(
        key, (out_channels, in_channels, kernel),
        minval=-scale, maxval=scale, dtype=jnp.float32)
    bias = jnp.zeros((out_channels,), jnp.float32)    # init_layer: bias -> 0
    gamma = jnp.ones((out_channels,), jnp.float32)    # init_bn: weight -> 1
    beta = jnp.zeros((out_channels,), jnp.float32)    # init_bn: bias -> 0
    return weight, bias, gamma, beta


def _reference_forward(x, weight, bias, gamma, beta, kernel, stride, pad, dil):
    """Pure-JAX reference (lax conv + batch-stat BN + ReLU)."""
    y = jax.lax.conv_general_dilated(
        x, weight, window_strides=(stride,), padding=[(pad, pad)],
        rhs_dilation=(dil,), dimension_numbers=("NCH", "OIH", "NCH"))
    y = y + bias[None, :, None]
    mean = jnp.mean(y, axis=(0, 2), keepdims=True)
    var = jnp.mean((y - mean) ** 2, axis=(0, 2), keepdims=True)
    y = (y - mean) * jax.lax.rsqrt(var + BN_EPS)
    y = y * gamma[None, :, None] + beta[None, :, None]
    return jnp.maximum(y, 0.0)


if __name__ == "__main__":
    key = jax.random.PRNGKey(0)

    # --- config 1: stride 1, multiple row tiles (tile_rows=16 -> grid of 2) ---------
    N, C_IN, L = 2, 4, 16
    C_OUT, K, STRIDE, PAD, DIL = 8, 3, 1, 1, 1
    kx, kw, key = jax.random.split(key, 3)
    x = jax.random.normal(kx, (N, C_IN, L), dtype=jnp.float32)
    weight, bias, gamma, beta = init_params(kw, C_IN, C_OUT, K)

    out = conv_block1d_forward(
        x, weight, bias, gamma, beta,
        kernel=K, stride=STRIDE, pad=PAD, dil=DIL, tile_rows=16)
    out = jax.block_until_ready(out)
    ref = _reference_forward(x, weight, bias, gamma, beta, K, STRIDE, PAD, DIL)
    assert out.shape == ref.shape == (N, C_OUT, L)
    assert jnp.allclose(out, ref, atol=1e-4, rtol=1e-4), "f32 mismatch vs. reference"

    # bf16 matmul operands (f32 accumulation / BN math) -- looser tolerance.
    out_bf16 = jax.block_until_ready(conv_block1d_forward(
        x, weight, bias, gamma, beta,
        kernel=K, stride=STRIDE, pad=PAD, dil=DIL, use_bf16=True, tile_rows=16))
    assert jnp.allclose(out_bf16, ref, atol=1e-1, rtol=1e-1), "bf16 mismatch"

    # --- config 2: stride 2, dilation 2, non-128-aligned channel count --------------
    C_OUT2, K2, STRIDE2, PAD2, DIL2 = 6, 3, 2, 2, 2
    kx2, kw2, key = jax.random.split(key, 3)
    x2 = jax.random.normal(kx2, (N, C_IN, L), dtype=jnp.float32)
    w2, b2, g2, be2 = init_params(kw2, C_IN, C_OUT2, K2)
    out2 = jax.block_until_ready(conv_block1d_forward(
        x2, w2, b2, g2, be2, kernel=K2, stride=STRIDE2, pad=PAD2, dil=DIL2))
    ref2 = _reference_forward(x2, w2, b2, g2, be2, K2, STRIDE2, PAD2, DIL2)
    assert out2.shape == ref2.shape
    assert jnp.allclose(out2, ref2, atol=1e-4, rtol=1e-4), "strided/dilated mismatch"

    print("KERNEL_OK")
</pallas_src>

<mosaic_0001>
module attributes {stable_mosaic.version = 11 : i64} {
  func.func @conv_stats_kernel(%arg0: i32, %arg1: memref<16x128xf32, #tpu.memory_space<vmem>>, %arg2: memref<128x128xf32, #tpu.memory_space<vmem>>, %arg3: memref<16x128xf32, #tpu.memory_space<vmem>>, %arg4: memref<1x128xf32, #tpu.memory_space<vmem>>, %arg5: memref<1x128xf32, #tpu.memory_space<vmem>>) attributes {dimension_semantics = [#tpu.dimension_semantics<arbitrary>], iteration_bounds = array<i64: 2>, scalar_prefetch = 0 : i64, scratch_operands = 0 : i64, tpu.core_type = #tpu.core_type<tc>, window_params = [{transform_indices = @transform_0, window_bounds = array<i64: 16, 128>}, {pipeline_mode = #tpu.pipeline_mode<synchronous>, transform_indices = @transform_1, window_bounds = array<i64: 128, 128>}, {transform_indices = @transform_2, window_bounds = array<i64: 16, 128>}, {pipeline_mode = #tpu.pipeline_mode<synchronous>, transform_indices = @transform_3, window_bounds = array<i64: 1, 128>}, {pipeline_mode = #tpu.pipeline_mode<synchronous>, transform_indices = @transform_4, window_bounds = array<i64: 1, 128>}]} {
    %c0_i32 = arith.constant 0 : i32
    %0 = arith.cmpi eq, %arg0, %c0_i32 : i32
    %1 = arith.extui %0 : i1 to i32
    %c0_i32_0 = arith.constant 0 : i32
    %2 = arith.cmpi ne, %1, %c0_i32_0 : i32
    scf.if %2 {
      %cst_16 = arith.constant 0.000000e+00 : f32
      %18 = vector.broadcast %cst_16 : f32 to vector<1x128xf32>
      %c0_17 = arith.constant 0 : index
      %c0_18 = arith.constant 0 : index
      %19 = vector.load %arg4[%c0_17, %c0_18] : memref<1x128xf32, #tpu.memory_space<vmem>>, vector<1x128xf32>
      tpu.vector_store %arg4[%c0_17, %c0_18], %18 {strides = array<i32>} : memref<1x128xf32, #tpu.memory_space<vmem>>, vector<1x128xf32>,
      %cst_19 = arith.constant 0.000000e+00 : f32
      %20 = vector.broadcast %cst_19 : f32 to vector<1x128xf32>
      %c0_20 = arith.constant 0 : index
      %c0_21 = arith.constant 0 : index
      %21 = vector.load %arg5[%c0_20, %c0_21] : memref<1x128xf32, #tpu.memory_space<vmem>>, vector<1x128xf32>
      tpu.vector_store %arg5[%c0_20, %c0_21], %20 {strides = array<i32>} : memref<1x128xf32, #tpu.memory_space<vmem>>, vector<1x128xf32>,
    } else {
    }
    %c0 = arith.constant 0 : index
    %c0_1 = arith.constant 0 : index
    %3 = vector.load %arg1[%c0, %c0_1] : memref<16x128xf32, #tpu.memory_space<vmem>>, vector<16x128xf32>
    %c0_2 = arith.constant 0 : index
    %c0_3 = arith.constant 0 : index
    %4 = vector.load %arg2[%c0_2, %c0_3] : memref<128x128xf32, #tpu.memory_space<vmem>>, vector<128x128xf32>
    %cst = arith.constant dense<0.000000e+00> : vector<16x128xf32>
    %5 = tpu.matmul %3, %4, %cst {dimension_numbers = #tpu.dot_dimension_numbers<[1], [0], [0], [1], [0, 0, 1, 1], [], []>} : vector<16x128xf32>, vector<128x128xf32>, vector<16x128xf32> -> vector<16x128xf32>
    %c0_4 = arith.constant 0 : index
    %c0_5 = arith.constant 0 : index
    %6 = vector.load %arg3[%c0_4, %c0_5] : memref<16x128xf32, #tpu.memory_space<vmem>>, vector<16x128xf32>
    tpu.vector_store %arg3[%c0_4, %c0_5], %5 {strides = array<i32>} : memref<16x128xf32, #tpu.memory_space<vmem>>, vector<16x128xf32>,
    %c0_6 = arith.constant 0 : index
    %c0_7 = arith.constant 0 : index
    %7 = vector.load %arg4[%c0_6, %c0_7] : memref<1x128xf32, #tpu.memory_space<vmem>>, vector<1x128xf32>
    %cst_8 = arith.constant dense<0.000000e+00> : vector<128xf32>
    %8 = vector.multi_reduction <add>, %5, %cst_8 [0] : vector<16x128xf32> to vector<128xf32>
    %9 = vector.shape_cast %8 : vector<128xf32> to vector<1x128xf32>
    %10 = arith.addf %7, %9 : vector<1x128xf32>
    %c0_9 = arith.constant 0 : index
    %c0_10 = arith.constant 0 : index
    %11 = vector.load %arg4[%c0_9, %c0_10] : memref<1x128xf32, #tpu.memory_space<vmem>>, vector<1x128xf32>
    tpu.vector_store %arg4[%c0_9, %c0_10], %10 {strides = array<i32>} : memref<1x128xf32, #tpu.memory_space<vmem>>, vector<1x128xf32>,
    %c0_11 = arith.constant 0 : index
    %c0_12 = arith.constant 0 : index
    %12 = vector.load %arg5[%c0_11, %c0_12] : memref<1x128xf32, #tpu.memory_space<vmem>>, vector<1x128xf32>
    %13 = arith.mulf %5, %5 : vector<16x128xf32>
    %cst_13 = arith.constant dense<0.000000e+00> : vector<128xf32>
    %14 = vector.multi_reduction <add>, %13, %cst_13 [0] : vector<16x128xf32> to vector<128xf32>
    %15 = vector.shape_cast %14 : vector<128xf32> to vector<1x128xf32>
    %16 = arith.addf %12, %15 : vector<1x128xf32>
    %c0_14 = arith.constant 0 : index
    %c0_15 = arith.constant 0 : index
    %17 = vector.load %arg5[%c0_14, %c0_15] : memref<1x128xf32, #tpu.memory_space<vmem>>, vector<1x128xf32>
    tpu.vector_store %arg5[%c0_14, %c0_15], %16 {strides = array<i32>} : memref<1x128xf32, #tpu.memory_space<vmem>>, vector<1x128xf32>,
    return
  }
  func.func @transform_0(%arg0: i32) -> (i32, i32) {
    %c0_i32 = arith.constant 0 : i32
    %c0_i32_0 = arith.constant 0 : i32
    return %arg0, %c0_i32 : i32, i32
  }
  func.func @transform_1(%arg0: i32) -> (i32, i32) {
    %c0_i32 = arith.constant 0 : i32
    %c0_i32_0 = arith.constant 0 : i32
    %c0_i32_1 = arith.constant 0 : i32
    return %c0_i32, %c0_i32_0 : i32, i32
  }
  func.func @transform_2(%arg0: i32) -> (i32, i32) {
    %c0_i32 = arith.constant 0 : i32
    %c0_i32_0 = arith.constant 0 : i32
    return %arg0, %c0_i32 : i32, i32
  }
  func.func @transform_3(%arg0: i32) -> (i32, i32) {
    %c0_i32 = arith.constant 0 : i32
    %c0_i32_0 = arith.constant 0 : i32
    %c0_i32_1 = arith.constant 0 : i32
    return %c0_i32, %c0_i32_0 : i32, i32
  }
  func.func @transform_4(%arg0: i32) -> (i32, i32) {
    %c0_i32 = arith.constant 0 : i32
    %c0_i32_0 = arith.constant 0 : i32
    %c0_i32_1 = arith.constant 0 : i32
    return %c0_i32, %c0_i32_0 : i32, i32
  }
}

module attributes {stable_mosaic.version = 11 : i64} {
  func.func @bn_relu_kernel(%arg0: i32, %arg1: memref<16x128xf32, #tpu.memory_space<vmem>>, %arg2: memref<1x128xf32, #tpu.memory_space<vmem>>, %arg3: memref<1x128xf32, #tpu.memory_space<vmem>>, %arg4: memref<16x128xf32, #tpu.memory_space<vmem>>) attributes {dimension_semantics = [#tpu.dimension_semantics<parallel>], iteration_bounds = array<i64: 2>, scalar_prefetch = 0 : i64, scratch_operands = 0 : i64, tpu.core_type = #tpu.core_type<tc>, window_params = [{transform_indices = @transform_0, window_bounds = array<i64: 16, 128>}, {pipeline_mode = #tpu.pipeline_mode<synchronous>, transform_indices = @transform_1, window_bounds = array<i64: 1, 128>}, {pipeline_mode = #tpu.pipeline_mode<synchronous>, transform_indices = @transform_2, window_bounds = array<i64: 1, 128>}, {transform_indices = @transform_3, window_bounds = array<i64: 16, 128>}]} {
    %c0 = arith.constant 0 : index
    %c0_0 = arith.constant 0 : index
    %0 = vector.load %arg1[%c0, %c0_0] : memref<16x128xf32, #tpu.memory_space<vmem>>, vector<16x128xf32>
    %c0_1 = arith.constant 0 : index
    %c0_2 = arith.constant 0 : index
    %1 = vector.load %arg2[%c0_1, %c0_2] : memref<1x128xf32, #tpu.memory_space<vmem>>, vector<1x128xf32>
    %2 = vector.broadcast %1 : vector<1x128xf32> to vector<16x128xf32>
    %3 = arith.mulf %0, %2 : vector<16x128xf32>
    %c0_3 = arith.constant 0 : index
    %c0_4 = arith.constant 0 : index
    %4 = vector.load %arg3[%c0_3, %c0_4] : memref<1x128xf32, #tpu.memory_space<vmem>>, vector<1x128xf32>
    %5 = vector.broadcast %4 : vector<1x128xf32> to vector<16x128xf32>
    %6 = arith.addf %3, %5 : vector<16x128xf32>
    %cst = arith.constant 0.000000e+00 : f32
    %7 = vector.broadcast %cst : f32 to vector<16x128xf32>
    %8 = arith.maximumf %6, %7 : vector<16x128xf32>
    %c0_5 = arith.constant 0 : index
    %c0_6 = arith.constant 0 : index
    %9 = vector.load %arg4[%c0_5, %c0_6] : memref<16x128xf32, #tpu.memory_space<vmem>>, vector<16x128xf32>
    tpu.vector_store %arg4[%c0_5, %c0_6], %8 {strides = array<i32>} : memref<16x128xf32, #tpu.memory_space<vmem>>, vector<16x128xf32>,
    return
  }
  func.func @transform_0(%arg0: i32) -> (i32, i32) {
    %c0_i32 = arith.constant 0 : i32
    %c0_i32_0 = arith.constant 0 : i32
    return %arg0, %c0_i32 : i32, i32
  }
  func.func @transform_1(%arg0: i32) -> (i32, i32) {
    %c0_i32 = arith.constant 0 : i32
    %c0_i32_0 = arith.constant 0 : i32
    %c0_i32_1 = arith.constant 0 : i32
    return %c0_i32, %c0_i32_0 : i32, i32
  }
  func.func @transform_2(%arg0: i32) -> (i32, i32) {
    %c0_i32 = arith.constant 0 : i32
    %c0_i32_0 = arith.constant 0 : i32
    %c0_i32_1 = arith.constant 0 : i32
    return %c0_i32, %c0_i32_0 : i32, i32
  }
  func.func @transform_3(%arg0: i32) -> (i32, i32) {
    %c0_i32 = arith.constant 0 : i32
    %c0_i32_0 = arith.constant 0 : i32
    return %arg0, %c0_i32 : i32, i32
  }
}

</mosaic_0001>

<bundles_post_ra>
// kernel: conv_block1d_forward.3
= control target key start
LH: loop header
LB: loop body
LE: loop exit
PB: predicated region body
PF: predicated region fallthrough
CT: control target
= control target key end

     0   :  { %s297_s12 = smov 0   ;;  %s314_s0 = inlined_call_operand.vmem [shape: f32[32,128], index: 0, kind: input, shape index: {}]   ;;  %s315_s1 = inlined_call_operand.vmem [shape: f32[1,128], index: 1, kind: input, shape index: {}]   ;;  %s316_s2 = inlined_call_operand.vmem [shape: f32[1,128], index: 2, kind: input, shape index: {}]   ;;  %s317_s3 = inlined_call_operand.vmem [shape: f32[32,128], index: 3, kind: output, shape index: {}]  }
   0x1 LB: > { %s248_s13 = sadd.s32 4294967295, %s275_s12   ;;  %p252_p0 = scmp.ge.s32.totalorder %s275_s12, 1  ;;  %s275_s12 = sphi %s297_s12, %s13_s12  }
   0x2   : > { %p138_p1 = scmp.lt.s32.totalorder %s275_s12, 3 }
   0x4   : > { %p139_p2 = pnand %p252_p0, %p138_p1 }
   0x5   : > { %s253_s14 = sshll.u32 (!%p139_p2), %s248_s13, 1 }
   0x6   : > { %142 = sbr.rel (%p139_p2) target bundleno = 23 (0x17), region = 32  ;;  %p163_p3 = scmp.lt.s32.totalorder (!%p139_p2), %s253_s14, 3 }
   0xb   : > { %s319_s14 = smov (!%p163_p3, %s253_s14), 3  ;;  %v267_v0 = vld [vmem:[%s315_s1] ss:$0 sm:$0xff] }
   0xc   : > { %s254_s17 = sshll.u32 %s319_s14, 3  ;;  %v268_v1 = vld [vmem:[%s316_s2] ss:$0 sm:$0xff] }
   0xd   : > { %s166_s20 = scalar_lea.vmem %s314_s0, %s254_s17  ;;  %s172_s25 = scalar_lea.vmem %s317_s3, %s254_s17 }
   0xe   : > { %v174_v2 = vld [vmem:[%s166_s20] sm:$0xff]  ;;  %v175_v3 = vld [vmem:[%s166_s20 + $0x8] sm:$0xff] }
   0xf   : > { %v180_v4 = vmul.f32 %v267_v0, %v174_v2  ;;  %v181_v5 = vmul.f32 %v267_v0, %v175_v3 }
  0x11   : > { %v186_v6 = vadd.f32 %v268_v1, %v180_v4  ;;  %v187_v7 = vadd.f32 %v268_v1, %v181_v5 }
  0x13   : > { %v188_v8 = vmax.f32 %v186_v6, 0.0  ;;  %v189_v9 = vmax.f32 %v187_v7, 0.0 }
  0x15   : > { %190 = vst [vmem:[%s172_s25] sm:$0xff] %v188_v8 }
  0x16   : > { %191 = vst [vmem:[%s172_s25 + $0x8] sm:$0xff] %v189_v9 }
  0x17 PF: > { %s13_s12 = sadd.s32 1, %s275_s12  }
  0x18   : > { %p10_p4 = scmp.ge.s32.totalorder %s13_s12, 4  }
  0x1a   :  { %12 = sbr.rel (!%p10_p4) target bundleno = 1 (0x1), region = 62 }

// kernel: conv_block1d_forward.2
= control target key start
LH: loop header
LB: loop body
LE: loop exit
PB: predicated region body
PF: predicated region fallthrough
CT: control target
= control target key end

     0   :  { %s406_s15 = smov 0   ;;  %s497_s0 = inlined_call_operand.vmem [shape: f32[32,128], index: 0, kind: input, shape index: {}]   ;;  %s498_s1 = inlined_call_operand.vmem [shape: f32[128,128], index: 1, kind: input, shape index: {}]   ;;  %s499_s2 = inlined_call_operand.vmem [shape: f32[32,128], index: 2, kind: output, shape index: {0}]   ;;  %s500_s3 = inlined_call_operand.vmem [shape: f32[1,128], index: 3, kind: output, shape index: {1}]   ;;  %s501_s4 = inlined_call_operand.vmem [shape: f32[1,128], index: 4, kind: output, shape index: {2}]  }
   0x1 LB: > { %s335_s16 = sadd.s32 4294967295, %s378_s15   ;;  %p339_p0 = scmp.ge.s32.totalorder %s378_s15, 1  ;;  %s378_s15 = sphi %s406_s15, %s15_s15  }
   0x2   : > { %p158_p1 = scmp.lt.s32.totalorder %s378_s15, 3 }
   0x4   : > { %p159_p2 = pnand %p339_p0, %p158_p1 }
   0x5   : > { %s340_s17 = sshll.u32 (!%p159_p2), %s335_s16, 1  ;;  %p344_p4 = scmp.ne.s32.totalorder (!%p159_p2), %s335_s16, 0 }
   0x6   : > { %162 = sbr.rel (%p159_p2) target bundleno = 196 (0xc4), region = 28  ;;  %p185_p3 = scmp.lt.s32.totalorder (!%p159_p2), %s340_s17, 3 }
   0xb   : > { %s503_s17 = smov (!%p185_p3, %s340_s17), 3  ;;  %199 = sbr.rel (%p344_p4) target bundleno = 19 (0x13), region = 32 }
   0xc   : > { %s341_s18 = sshll.u32 %s503_s17, 3 }
   0xd   : > { %s417_s21 = scalar_lea.vmem %s497_s0, %s341_s18  ;;  %s422_s24 = scalar_lea.vmem %s499_s2, %s341_s18 }
  0x10   : > { %v380_v0 = vmov 0.0  }
  0x11   : > { %200 = vst [vmem:[%s500_s3] sm:$0x1] %v380_v0 }
  0x12   : > { %201 = vst [vmem:[%s501_s4] sm:$0x1] %v380_v0 }
  0x13 PF: > { %v219_v1 = vld [vmem:[%s498_s1 + $0x78] sm:$0xff]  ;;  %v218_v2 = vld [vmem:[%s498_s1 + $0x70] sm:$0xff]  ;;  %v217_v3 = vld [vmem:[%s498_s1 + $0x68] sm:$0xff] }
  0x14   : > { %220 = vmatpush.msra.mxu0 %v219_v1  ;;  %347 = vmatpush.msra.mxu1 %v219_v1  ;;  %v216_v4 = vld [vmem:[%s498_s1 + $0x60] sm:$0xff]  ;;  %v215_v5 = vld [vmem:[%s498_s1 + $0x58] sm:$0xff]  ;;  %v214_v6 = vld [vmem:[%s498_s1 + $0x50] sm:$0xff] }
  0x15   : > { %v213_v7 = vld [vmem:[%s498_s1 + $0x48] sm:$0xff]  ;;  %v212_v8 = vld [vmem:[%s498_s1 + $0x40] sm:$0xff]  ;;  %v211_v9 = vld [vmem:[%s498_s1 + $0x38] sm:$0xff] }
  0x16   : > { %221 = vmatpush.msra.mxu0 %v218_v2  ;;  %348 = vmatpush.msra.mxu1 %v218_v2  ;;  %v210_v10 = vld [vmem:[%s498_s1 + $0x30] sm:$0xff]  ;;  %v209_v11 = vld [vmem:[%s498_s1 + $0x28] sm:$0xff]  ;;  %v208_v12 = vld [vmem:[%s498_s1 + $0x20] sm:$0xff] }
  0x17   : > { %v207_v13 = vld [vmem:[%s498_s1 + $0x18] sm:$0xff]  ;;  %v206_v14 = vld [vmem:[%s498_s1 + $0x10] sm:$0xff]  ;;  %v205_v15 = vld [vmem:[%s498_s1 + $0x8] sm:$0xff] }
  0x18   : > { %222 = vmatpush.msra.mxu0 %v217_v3  ;;  %349 = vmatpush.msra.mxu1 %v217_v3  ;;  %v204_v16 = vld [vmem:[%s498_s1] sm:$0xff]  ;;  %v203_v18 = vld [vmem:[%s417_s21 + $0x8] sm:$0xff] }
  0x19   : > { %v202_v17 = vld [vmem:[%s417_s21] sm:$0xff] }
  0x1a   : > { %223 = vmatpush.msra.mxu0 %v216_v4  ;;  %350 = vmatpush.msra.mxu1 %v216_v4  ;;  %v245_v34 = vld [vmem:[%s500_s3] sm:$0x1] }
  0x1b   : > { %v255_v37 = vld [vmem:[%s501_s4] sm:$0x1] }
  0x1c   : > { %224 = vmatpush.msra.mxu0 %v215_v5  ;;  %351 = vmatpush.msra.mxu1 %v215_v5 }
  0x1e   : > { %225 = vmatpush.msra.mxu0 %v214_v6  ;;  %352 = vmatpush.msra.mxu1 %v214_v6 }
  0x20   : > { %226 = vmatpush.msra.mxu0 %v213_v7  ;;  %353 = vmatpush.msra.mxu1 %v213_v7 }
  0x22   : > { %227 = vmatpush.msra.mxu0 %v212_v8  ;;  %354 = vmatpush.msra.mxu1 %v212_v8 }
  0x24   : > { %228 = vmatpush.msra.mxu0 %v211_v9  ;;  %355 = vmatpush.msra.mxu1 %v211_v9 }
  0x26   : > { %229 = vmatpush.msra.mxu0 %v210_v10  ;;  %356 = vmatpush.msra.mxu1 %v210_v10 }
  0x28   : > { %230 = vmatpush.msra.mxu0 %v209_v11  ;;  %357 = vmatpush.msra.mxu1 %v209_v11 }
  0x2a   : > { %231 = vmatpush.msra.mxu0 %v208_v12  ;;  %358 = vmatpush.msra.mxu1 %v208_v12 }
  0x2c   : > { %232 = vmatpush.msra.mxu0 %v207_v13  ;;  %359 = vmatpush.msra.mxu1 %v207_v13 }
  0x2e   : > { %233 = vmatpush.msra.mxu0 %v206_v14  ;;  %360 = vmatpush.msra.mxu1 %v206_v14 }
  0x30   : > { %234 = vmatpush.msra.mxu0 %v205_v15  ;;  %361 = vmatpush.msra.mxu1 %v205_v15 }
  0x32   : > { %235 = vmatpush.msra.mxu0 %v204_v16  ;;  %362 = vmatpush.msra.mxu1 %v204_v16 }
  0x33   : > { %236 = vmatmul.f32.vlgmr.msra.gmra.mxu0 %v202_v17  ;;  %239 = vmatmul.f32.vlgmr.msra.gmra.mxu1 %v203_v18 }
  0xb0   : > { %v237_v19 = vpop.f32.mrf.mxu0  ;;  %v240_v20 = vpop.f32.mrf.mxu1 }
  0xb1   : > { %243 = vst [vmem:[%s422_s24] sm:$0xff] %v237_v19  ;;  %v256_v21 = vmul.f32 %v237_v19, %v237_v19  ;;  %v246_v22 = vadd.f32 %v240_v20, %v237_v19  ;;  %v257_v23 = vmul.f32 %v240_v20, %v240_v20 }
  0xb2   : > { %244 = vst [vmem:[%s422_s24 + $0x8] sm:$0xff] %v240_v20 }
  0xb3   : > { %v247_v24 = vrot.slane %v246_v22, 4  ;;  %v258_v25 = vadd.f32 %v257_v23, %v256_v21 }
  0xb5   : > { %v248_v26 = vadd.f32 %v247_v24, %v246_v22  ;;  %v259_v27 = vrot.slane %v258_v25, 4 }
  0xb7   : > { %v249_v28 = vrot.slane %v248_v26, 2  ;;  %v260_v29 = vadd.f32 %v259_v27, %v258_v25 }
  0xb9   : > { %v250_v30 = vadd.f32 %v249_v28, %v248_v26  ;;  %v261_v31 = vrot.slane %v260_v29, 2 }
  0xbb   : > { %v251_v32 = vrot.slane %v250_v30, 1  ;;  %v262_v33 = vadd.f32 %v261_v31, %v260_v29 }
  0xbd   : > { %v252_v35 = vadd.f32 %v251_v32, %v250_v30  ;;  %v263_v36 = vrot.slane %v262_v33, 1 }
  0xbf   : > { %v253_v38 = vadd.f32 %v252_v35, %v245_v34  ;;  %v264_v39 = vadd.f32 %v263_v36, %v262_v33 }
  0xc1   : > { %254 = vst [vmem:[%s500_s3] sm:$0x1] %v253_v38  ;;  %v265_v40 = vadd.f32 %v264_v39, %v255_v37 }
  0xc3   : > { %266 = vst [vmem:[%s501_s4] sm:$0x1] %v265_v40 }
  0xc4 PF: > { %s15_s15 = sadd.s32 1, %s378_s15  }
  0xc5   : > { %p12_p5 = scmp.ge.s32.totalorder %s15_s15, 4  }
  0xc7   :  { %14 = sbr.rel (!%p12_p5) target bundleno = 1 (0x1), region = 78 }

</bundles_post_ra>
